<compile_context>
chip_gen: v5e
topology: v5e:2x2
jax: 0.10.0
libtpu: 0.0.40
codegen_flags: <defaults>
</compile_context>

<pallas_src>
import jax
import jax.numpy as jnp
from jax.experimental import pallas as pl
from jax.experimental.pallas import tpu as pltpu

# ---- problem sizes (small, consistent with the module) ----
VOCAB = 100        # synthetic stand-in for the GloVe vocab
D = 50             # input_size == GloVe dim=50
H = 32             # hidden_size
C = 2              # num_classes
B = 2              # batch
T = 8              # sequence length
OUT_PAD = 128      # lane-dense padded output width (>= C)
VOCAB_PAD = ((VOCAB + 7) // 8) * 8   # sublane-aligned table rows


def lstm_fc_kernel(tok_ref, table_ref, w_hh_ref, w_fc_ref, b_fc_ref, out_ref):
    """In-kernel gather from a pre-projected table + unrolled LSTM + padded Linear.

    tok_ref  : (B, T)           int32  SMEM token ids
    table_ref: (VOCAB_PAD, 4H)  f32    VMEM embedding table pre-multiplied by W_ih^T
                                       (g-cols pre-scaled x2) with b_ih+b_hh folded in
    w_hh_ref : (H, 4H)          f32    hidden->gates weights (pre-transposed, g-cols x2)
    w_fc_ref : (H, OUT_PAD)     f32    final linear weights, zero-padded to 128 lanes
    b_fc_ref : (1, OUT_PAD)     f32    final linear bias, zero-padded
    out_ref  : (B, OUT_PAD)     f32    lane-dense padded logits (real logits in [:, :C])
    """
    hidden = w_hh_ref.shape[0]
    batch, n_steps = tok_ref.shape

    w_hh = w_hh_ref[...]

    h = jnp.zeros((batch, hidden), jnp.float32)
    c = jnp.zeros((batch, hidden), jnp.float32)

    # Statically unrolled recurrence (T is a small compile-time constant).
    for t in range(n_steps):
        # Pre-projected gate inputs: one dynamic-row VMEM load per batch element.
        # These loads depend only on the SMEM token ids, so they are not on the
        # serial h/c dependence chain and can be issued ahead by the scheduler.
        xw_t = jnp.concatenate(
            [table_ref[pl.ds(tok_ref[b, t], 1), :] for b in range(batch)],
            axis=0)                                                        # (B, 4H)
        gates = xw_t + jnp.dot(h, w_hh, preferred_element_type=jnp.float32)  # (B, 4H)
        # One vreg-wide sigmoid over all 4H=128 lanes; g-gate columns were pre-scaled
        # by 2 so tanh(z) = 2*sigmoid(2z) - 1 is recovered after the fused pass.
        s = jax.nn.sigmoid(gates)
        i_g = s[:, 0 * hidden:1 * hidden]
        f_g = s[:, 1 * hidden:2 * hidden]
        g_g = 2.0 * s[:, 2 * hidden:3 * hidden] - 1.0
        o_g = s[:, 3 * hidden:4 * hidden]
        c = f_g * c + i_g * g_g
        h = o_g * jnp.tanh(c)

    # Final Linear on h_T, lane-dense padded store.
    out_ref[...] = (jnp.dot(h, w_fc_ref[...], preferred_element_type=jnp.float32)
                    + b_fc_ref[...])


def prepare_params(params):
    """One-time weight preprocessing off the hot path.

    Folds W_ih (pre-transposed, g-cols scaled x2) and the combined bias into the
    embedding table, pads the table rows to a sublane multiple, and pads the final
    Linear to a lane-dense 128-wide output.
    """
    emb_tbl, w_ih, w_hh, b_ih, b_hh, w_fc, b_fc = params
    # Scale the g-gate (3rd block of H columns) by 2 so the kernel can use a single
    # fused sigmoid and recover tanh via 2*sigmoid(2z)-1.
    gate_scale = jnp.concatenate(
        [jnp.ones((2 * H,), jnp.float32),
         jnp.full((H,), 2.0, jnp.float32),
         jnp.ones((H,), jnp.float32)])                                   # (4H,)
    w_ih_t = w_ih.T.astype(jnp.float32) * gate_scale[None, :]            # (D, 4H)
    w_hh_t = w_hh.T.astype(jnp.float32) * gate_scale[None, :]            # (H, 4H)
    b_comb = ((b_ih + b_hh).astype(jnp.float32) * gate_scale)[None, :]   # (1, 4H)

    # Fold input projection + bias into the embedding table: gather -> gate inputs.
    table_proj = emb_tbl.astype(jnp.float32) @ w_ih_t + b_comb           # (VOCAB, 4H)
    table_pad = jnp.zeros((VOCAB_PAD, 4 * H), jnp.float32).at[:VOCAB, :].set(table_proj)

    w_fc_pad = jnp.zeros((H, OUT_PAD), jnp.float32).at[:, :C].set(w_fc.T.astype(jnp.float32))
    b_fc_pad = jnp.zeros((1, OUT_PAD), jnp.float32).at[0, :C].set(b_fc.astype(jnp.float32))
    return (table_pad, w_hh_t, w_fc_pad, b_fc_pad)


def _forward(token_ids, kparams):
    """Single fused pallas_call: in-kernel gather + LSTM + FC. Returns padded logits."""
    table_pad, w_hh_t, w_fc_pad, b_fc_pad = kparams
    vmem = pltpu.MemorySpace.VMEM
    smem = pltpu.MemorySpace.SMEM
    out_pad = pl.pallas_call(
        lstm_fc_kernel,
        out_shape=jax.ShapeDtypeStruct((B, OUT_PAD), jnp.float32),
        in_specs=[pl.BlockSpec(memory_space=smem),    # token ids -> SMEM scalars
                  pl.BlockSpec(memory_space=vmem),    # projected embedding table
                  pl.BlockSpec(memory_space=vmem),    # W_hh
                  pl.BlockSpec(memory_space=vmem),    # W_fc (padded)
                  pl.BlockSpec(memory_space=vmem)],   # b_fc (padded)
        out_specs=pl.BlockSpec(memory_space=vmem),
    )(token_ids, table_pad, w_hh_t, w_fc_pad, b_fc_pad)
    # Padded (B, 128) logits; real logits live in [:, :C]. Slicing is left to the
    # consumer so the jitted hot path stays a single pallas_call.
    return out_pad


sentiment_forward = jax.jit(_forward)


def reference_forward(token_ids, params):
    """Pure-JAX reference (same math as the PyTorch module, un-fused)."""
    emb_tbl, w_ih, w_hh, b_ih, b_hh, w_fc, b_fc = params
    x = jnp.take(emb_tbl, token_ids, axis=0)      # (B, T, D)
    h = jnp.zeros((token_ids.shape[0], H), jnp.float32)
    c = jnp.zeros((token_ids.shape[0], H), jnp.float32)
    for t in range(token_ids.shape[1]):
        gates = x[:, t, :] @ w_ih.T + h @ w_hh.T + b_ih + b_hh
        i_g = jax.nn.sigmoid(gates[:, 0 * H:1 * H])
        f_g = jax.nn.sigmoid(gates[:, 1 * H:2 * H])
        g_g = jnp.tanh(gates[:, 2 * H:3 * H])
        o_g = jax.nn.sigmoid(gates[:, 3 * H:4 * H])
        c = f_g * c + i_g * g_g
        h = o_g * jnp.tanh(c)
    return h @ w_fc.T + b_fc


def init_params(key):
    ks = jax.random.split(key, 7)
    # TODO(synk): real GloVe vectors come from a file; a synthetic random table stands in.
    emb_tbl = jax.random.normal(ks[0], (VOCAB, D), jnp.float32) * 0.1
    s = 1.0 / jnp.sqrt(H)
    w_ih = jax.random.uniform(ks[1], (4 * H, D), jnp.float32, -s, s)
    w_hh = jax.random.uniform(ks[2], (4 * H, H), jnp.float32, -s, s)
    b_ih = jax.random.uniform(ks[3], (4 * H,), jnp.float32, -s, s)
    b_hh = jax.random.uniform(ks[4], (4 * H,), jnp.float32, -s, s)
    w_fc = jax.random.uniform(ks[5], (C, H), jnp.float32, -s, s)
    b_fc = jax.random.uniform(ks[6], (C,), jnp.float32, -s, s)
    return (emb_tbl, w_ih, w_hh, b_ih, b_hh, w_fc, b_fc)


if __name__ == "__main__":
    key = jax.random.PRNGKey(0)
    k_param, k_tok = jax.random.split(key)
    params = init_params(k_param)
    kernel_params = prepare_params(params)            # one-time weight prep
    token_ids = jax.random.randint(k_tok, (B, T), 0, VOCAB, dtype=jnp.int32)

    out_pad = jax.block_until_ready(sentiment_forward(token_ids, kernel_params))
    logits = out_pad[:, :C]                            # consumer-side slice (off hot path)
    ref = jax.block_until_ready(reference_forward(token_ids, params))

    assert logits.shape == (B, C)
    assert jnp.allclose(logits, ref, atol=2e-3, rtol=2e-3), (logits, ref)
    print("KERNEL_OK")
</pallas_src>

<mosaic_0001>
module attributes {stable_mosaic.version = 11 : i64} {
  func.func @lstm_fc_kernel(%arg0: memref<2x8xi32, #tpu.memory_space<smem>>, %arg1: memref<104x128xf32, #tpu.memory_space<vmem>>, %arg2: memref<32x128xf32, #tpu.memory_space<vmem>>, %arg3: memref<32x128xf32, #tpu.memory_space<vmem>>, %arg4: memref<1x128xf32, #tpu.memory_space<vmem>>, %arg5: memref<2x128xf32, #tpu.memory_space<vmem>>) attributes {dimension_semantics = [], scalar_prefetch = 0 : i64, scratch_operands = 0 : i64, tpu.core_type = #tpu.core_type<tc>} {
    %c0 = arith.constant 0 : index
    %c0_0 = arith.constant 0 : index
    %0 = vector.load %arg2[%c0, %c0_0] : memref<32x128xf32, #tpu.memory_space<vmem>>, vector<32x128xf32>
    %cst = arith.constant 0.000000e+00 : f32
    %1 = vector.broadcast %cst : f32 to vector<2x32xf32>
    %cst_1 = arith.constant 0.000000e+00 : f32
    %2 = vector.broadcast %cst_1 : f32 to vector<2x32xf32>
    %c0_2 = arith.constant 0 : index
    %c0_3 = arith.constant 0 : index
    %3 = memref.load %arg0[%c0_2, %c0_3] : memref<2x8xi32, #tpu.memory_space<smem>>
    %4 = arith.index_cast %3 : i32 to index
    %c0_4 = arith.constant 0 : index
    %5 = vector.load %arg1[%4, %c0_4] : memref<104x128xf32, #tpu.memory_space<vmem>>, vector<1x128xf32>
    %c1 = arith.constant 1 : index
    %c0_5 = arith.constant 0 : index
    %6 = memref.load %arg0[%c1, %c0_5] : memref<2x8xi32, #tpu.memory_space<smem>>
    %7 = arith.index_cast %6 : i32 to index
    %c0_6 = arith.constant 0 : index
    %8 = vector.load %arg1[%7, %c0_6] : memref<104x128xf32, #tpu.memory_space<vmem>>, vector<1x128xf32>
    %9 = tpu.concatenate %5, %8 in 0 : vector<1x128xf32>, vector<1x128xf32> -> vector<2x128xf32>
    %cst_7 = arith.constant dense<0.000000e+00> : vector<2x128xf32>
    %10 = tpu.matmul %1, %0, %cst_7 {dimension_numbers = #tpu.dot_dimension_numbers<[1], [0], [0], [1], [0, 0, 1, 1], [], []>} : vector<2x32xf32>, vector<32x128xf32>, vector<2x128xf32> -> vector<2x128xf32>
    %11 = arith.addf %9, %10 : vector<2x128xf32>
    %12 = arith.negf %11 : vector<2x128xf32>
    %13 = math.exp %12 : vector<2x128xf32>
    %cst_8 = arith.constant 1.000000e+00 : f32
    %14 = vector.broadcast %cst_8 : f32 to vector<2x128xf32>
    %15 = arith.addf %14, %13 : vector<2x128xf32>
    %16 = arith.divf %14, %15 : vector<2x128xf32>
    %17 = vector.extract_strided_slice %16 {offsets = [0, 0], sizes = [2, 32], strides = [1, 1]} : vector<2x128xf32> to vector<2x32xf32>
    %18 = vector.extract_strided_slice %16 {offsets = [0, 32], sizes = [2, 32], strides = [1, 1]} : vector<2x128xf32> to vector<2x32xf32>
    %19 = vector.extract_strided_slice %16 {offsets = [0, 64], sizes = [2, 32], strides = [1, 1]} : vector<2x128xf32> to vector<2x32xf32>
    %cst_9 = arith.constant 2.000000e+00 : f32
    %20 = vector.broadcast %cst_9 : f32 to vector<2x32xf32>
    %21 = arith.mulf %20, %19 : vector<2x32xf32>
    %cst_10 = arith.constant 1.000000e+00 : f32
    %22 = vector.broadcast %cst_10 : f32 to vector<2x32xf32>
    %23 = arith.subf %21, %22 : vector<2x32xf32>
    %24 = vector.extract_strided_slice %16 {offsets = [0, 96], sizes = [2, 32], strides = [1, 1]} : vector<2x128xf32> to vector<2x32xf32>
    %25 = arith.mulf %18, %2 : vector<2x32xf32>
    %26 = arith.mulf %17, %23 : vector<2x32xf32>
    %27 = arith.addf %25, %26 : vector<2x32xf32>
    %28 = math.tanh %27 : vector<2x32xf32>
    %29 = arith.mulf %24, %28 : vector<2x32xf32>
    %c0_11 = arith.constant 0 : index
    %c1_12 = arith.constant 1 : index
    %30 = memref.load %arg0[%c0_11, %c1_12] : memref<2x8xi32, #tpu.memory_space<smem>>
    %31 = arith.index_cast %30 : i32 to index
    %c0_13 = arith.constant 0 : index
    %32 = vector.load %arg1[%31, %c0_13] : memref<104x128xf32, #tpu.memory_space<vmem>>, vector<1x128xf32>
    %c1_14 = arith.constant 1 : index
    %c1_15 = arith.constant 1 : index
    %33 = memref.load %arg0[%c1_14, %c1_15] : memref<2x8xi32, #tpu.memory_space<smem>>
    %34 = arith.index_cast %33 : i32 to index
    %c0_16 = arith.constant 0 : index
    %35 = vector.load %arg1[%34, %c0_16] : memref<104x128xf32, #tpu.memory_space<vmem>>, vector<1x128xf32>
    %36 = tpu.concatenate %32, %35 in 0 : vector<1x128xf32>, vector<1x128xf32> -> vector<2x128xf32>
    %cst_17 = arith.constant dense<0.000000e+00> : vector<2x128xf32>
    %37 = tpu.matmul %29, %0, %cst_17 {dimension_numbers = #tpu.dot_dimension_numbers<[1], [0], [0], [1], [0, 0, 1, 1], [], []>} : vector<2x32xf32>, vector<32x128xf32>, vector<2x128xf32> -> vector<2x128xf32>
    %38 = arith.addf %36, %37 : vector<2x128xf32>
    %39 = arith.negf %38 : vector<2x128xf32>
    %40 = math.exp %39 : vector<2x128xf32>
    %cst_18 = arith.constant 1.000000e+00 : f32
    %41 = vector.broadcast %cst_18 : f32 to vector<2x128xf32>
    %42 = arith.addf %41, %40 : vector<2x128xf32>
    %43 = arith.divf %41, %42 : vector<2x128xf32>
    %44 = vector.extract_strided_slice %43 {offsets = [0, 0], sizes = [2, 32], strides = [1, 1]} : vector<2x128xf32> to vector<2x32xf32>
    %45 = vector.extract_strided_slice %43 {offsets = [0, 32], sizes = [2, 32], strides = [1, 1]} : vector<2x128xf32> to vector<2x32xf32>
    %46 = vector.extract_strided_slice %43 {offsets = [0, 64], sizes = [2, 32], strides = [1, 1]} : vector<2x128xf32> to vector<2x32xf32>
    %cst_19 = arith.constant 2.000000e+00 : f32
    %47 = vector.broadcast %cst_19 : f32 to vector<2x32xf32>
    %48 = arith.mulf %47, %46 : vector<2x32xf32>
    %cst_20 = arith.constant 1.000000e+00 : f32
    %49 = vector.broadcast %cst_20 : f32 to vector<2x32xf32>
    %50 = arith.subf %48, %49 : vector<2x32xf32>
    %51 = vector.extract_strided_slice %43 {offsets = [0, 96], sizes = [2, 32], strides = [1, 1]} : vector<2x128xf32> to vector<2x32xf32>
    %52 = arith.mulf %45, %27 : vector<2x32xf32>
    %53 = arith.mulf %44, %50 : vector<2x32xf32>
    %54 = arith.addf %52, %53 : vector<2x32xf32>
    %55 = math.tanh %54 : vector<2x32xf32>
    %56 = arith.mulf %51, %55 : vector<2x32xf32>
    %c0_21 = arith.constant 0 : index
    %c2 = arith.constant 2 : index
    %57 = memref.load %arg0[%c0_21, %c2] : memref<2x8xi32, #tpu.memory_space<smem>>
    %58 = arith.index_cast %57 : i32 to index
    %c0_22 = arith.constant 0 : index
    %59 = vector.load %arg1[%58, %c0_22] : memref<104x128xf32, #tpu.memory_space<vmem>>, vector<1x128xf32>
    %c1_23 = arith.constant 1 : index
    %c2_24 = arith.constant 2 : index
    %60 = memref.load %arg0[%c1_23, %c2_24] : memref<2x8xi32, #tpu.memory_space<smem>>
    %61 = arith.index_cast %60 : i32 to index
    %c0_25 = arith.constant 0 : index
    %62 = vector.load %arg1[%61, %c0_25] : memref<104x128xf32, #tpu.memory_space<vmem>>, vector<1x128xf32>
    %63 = tpu.concatenate %59, %62 in 0 : vector<1x128xf32>, vector<1x128xf32> -> vector<2x128xf32>
    %cst_26 = arith.constant dense<0.000000e+00> : vector<2x128xf32>
    %64 = tpu.matmul %56, %0, %cst_26 {dimension_numbers = #tpu.dot_dimension_numbers<[1], [0], [0], [1], [0, 0, 1, 1], [], []>} : vector<2x32xf32>, vector<32x128xf32>, vector<2x128xf32> -> vector<2x128xf32>
    %65 = arith.addf %63, %64 : vector<2x128xf32>
    %66 = arith.negf %65 : vector<2x128xf32>
    %67 = math.exp %66 : vector<2x128xf32>
    %cst_27 = arith.constant 1.000000e+00 : f32
    %68 = vector.broadcast %cst_27 : f32 to vector<2x128xf32>
    %69 = arith.addf %68, %67 : vector<2x128xf32>
    %70 = arith.divf %68, %69 : vector<2x128xf32>
    %71 = vector.extract_strided_slice %70 {offsets = [0, 0], sizes = [2, 32], strides = [1, 1]} : vector<2x128xf32> to vector<2x32xf32>
    %72 = vector.extract_strided_slice %70 {offsets = [0, 32], sizes = [2, 32], strides = [1, 1]} : vector<2x128xf32> to vector<2x32xf32>
    %73 = vector.extract_strided_slice %70 {offsets = [0, 64], sizes = [2, 32], strides = [1, 1]} : vector<2x128xf32> to vector<2x32xf32>
    %cst_28 = arith.constant 2.000000e+00 : f32
    %74 = vector.broadcast %cst_28 : f32 to vector<2x32xf32>
    %75 = arith.mulf %74, %73 : vector<2x32xf32>
    %cst_29 = arith.constant 1.000000e+00 : f32
    %76 = vector.broadcast %cst_29 : f32 to vector<2x32xf32>
    %77 = arith.subf %75, %76 : vector<2x32xf32>
    %78 = vector.extract_strided_slice %70 {offsets = [0, 96], sizes = [2, 32], strides = [1, 1]} : vector<2x128xf32> to vector<2x32xf32>
    %79 = arith.mulf %72, %54 : vector<2x32xf32>
    %80 = arith.mulf %71, %77 : vector<2x32xf32>
    %81 = arith.addf %79, %80 : vector<2x32xf32>
    %82 = math.tanh %81 : vector<2x32xf32>
    %83 = arith.mulf %78, %82 : vector<2x32xf32>
    %c0_30 = arith.constant 0 : index
    %c3 = arith.constant 3 : index
    %84 = memref.load %arg0[%c0_30, %c3] : memref<2x8xi32, #tpu.memory_space<smem>>
    %85 = arith.index_cast %84 : i32 to index
    %c0_31 = arith.constant 0 : index
    %86 = vector.load %arg1[%85, %c0_31] : memref<104x128xf32, #tpu.memory_space<vmem>>, vector<1x128xf32>
    %c1_32 = arith.constant 1 : index
    %c3_33 = arith.constant 3 : index
    %87 = memref.load %arg0[%c1_32, %c3_33] : memref<2x8xi32, #tpu.memory_space<smem>>
    %88 = arith.index_cast %87 : i32 to index
    %c0_34 = arith.constant 0 : index
    %89 = vector.load %arg1[%88, %c0_34] : memref<104x128xf32, #tpu.memory_space<vmem>>, vector<1x128xf32>
    %90 = tpu.concatenate %86, %89 in 0 : vector<1x128xf32>, vector<1x128xf32> -> vector<2x128xf32>
    %cst_35 = arith.constant dense<0.000000e+00> : vector<2x128xf32>
    %91 = tpu.matmul %83, %0, %cst_35 {dimension_numbers = #tpu.dot_dimension_numbers<[1], [0], [0], [1], [0, 0, 1, 1], [], []>} : vector<2x32xf32>, vector<32x128xf32>, vector<2x128xf32> -> vector<2x128xf32>
    %92 = arith.addf %90, %91 : vector<2x128xf32>
    %93 = arith.negf %92 : vector<2x128xf32>
    %94 = math.exp %93 : vector<2x128xf32>
    %cst_36 = arith.constant 1.000000e+00 : f32
    %95 = vector.broadcast %cst_36 : f32 to vector<2x128xf32>
    %96 = arith.addf %95, %94 : vector<2x128xf32>
    %97 = arith.divf %95, %96 : vector<2x128xf32>
    %98 = vector.extract_strided_slice %97 {offsets = [0, 0], sizes = [2, 32], strides = [1, 1]} : vector<2x128xf32> to vector<2x32xf32>
    %99 = vector.extract_strided_slice %97 {offsets = [0, 32], sizes = [2, 32], strides = [1, 1]} : vector<2x128xf32> to vector<2x32xf32>
    %100 = vector.extract_strided_slice %97 {offsets = [0, 64], sizes = [2, 32], strides = [1, 1]} : vector<2x128xf32> to vector<2x32xf32>
    %cst_37 = arith.constant 2.000000e+00 : f32
    %101 = vector.broadcast %cst_37 : f32 to vector<2x32xf32>
    %102 = arith.mulf %101, %100 : vector<2x32xf32>
    %cst_38 = arith.constant 1.000000e+00 : f32
    %103 = vector.broadcast %cst_38 : f32 to vector<2x32xf32>
    %104 = arith.subf %102, %103 : vector<2x32xf32>
    %105 = vector.extract_strided_slice %97 {offsets = [0, 96], sizes = [2, 32], strides = [1, 1]} : vector<2x128xf32> to vector<2x32xf32>
    %106 = arith.mulf %99, %81 : vector<2x32xf32>
    %107 = arith.mulf %98, %104 : vector<2x32xf32>
    %108 = arith.addf %106, %107 : vector<2x32xf32>
    %109 = math.tanh %108 : vector<2x32xf32>
    %110 = arith.mulf %105, %109 : vector<2x32xf32>
    %c0_39 = arith.constant 0 : index
    %c4 = arith.constant 4 : index
    %111 = memref.load %arg0[%c0_39, %c4] : memref<2x8xi32, #tpu.memory_space<smem>>
    %112 = arith.index_cast %111 : i32 to index
    %c0_40 = arith.constant 0 : index
    %113 = vector.load %arg1[%112, %c0_40] : memref<104x128xf32, #tpu.memory_space<vmem>>, vector<1x128xf32>
    %c1_41 = arith.constant 1 : index
    %c4_42 = arith.constant 4 : index
    %114 = memref.load %arg0[%c1_41, %c4_42] : memref<2x8xi32, #tpu.memory_space<smem>>
    %115 = arith.index_cast %114 : i32 to index
    %c0_43 = arith.constant 0 : index
    %116 = vector.load %arg1[%115, %c0_43] : memref<104x128xf32, #tpu.memory_space<vmem>>, vector<1x128xf32>
    %117 = tpu.concatenate %113, %116 in 0 : vector<1x128xf32>, vector<1x128xf32> -> vector<2x128xf32>
    %cst_44 = arith.constant dense<0.000000e+00> : vector<2x128xf32>
    %118 = tpu.matmul %110, %0, %cst_44 {dimension_numbers = #tpu.dot_dimension_numbers<[1], [0], [0], [1], [0, 0, 1, 1], [], []>} : vector<2x32xf32>, vector<32x128xf32>, vector<2x128xf32> -> vector<2x128xf32>
    %119 = arith.addf %117, %118 : vector<2x128xf32>
    %120 = arith.negf %119 : vector<2x128xf32>
    %121 = math.exp %120 : vector<2x128xf32>
    %cst_45 = arith.constant 1.000000e+00 : f32
    %122 = vector.broadcast %cst_45 : f32 to vector<2x128xf32>
    %123 = arith.addf %122, %121 : vector<2x128xf32>
    %124 = arith.divf %122, %123 : vector<2x128xf32>
    %125 = vector.extract_strided_slice %124 {offsets = [0, 0], sizes = [2, 32], strides = [1, 1]} : vector<2x128xf32> to vector<2x32xf32>
    %126 = vector.extract_strided_slice %124 {offsets = [0, 32], sizes = [2, 32], strides = [1, 1]} : vector<2x128xf32> to vector<2x32xf32>
    %127 = vector.extract_strided_slice %124 {offsets = [0, 64], sizes = [2, 32], strides = [1, 1]} : vector<2x128xf32> to vector<2x32xf32>
    %cst_46 = arith.constant 2.000000e+00 : f32
    %128 = vector.broadcast %cst_46 : f32 to vector<2x32xf32>
    %129 = arith.mulf %128, %127 : vector<2x32xf32>
    %cst_47 = arith.constant 1.000000e+00 : f32
    %130 = vector.broadcast %cst_47 : f32 to vector<2x32xf32>
    %131 = arith.subf %129, %130 : vector<2x32xf32>
    %132 = vector.extract_strided_slice %124 {offsets = [0, 96], sizes = [2, 32], strides = [1, 1]} : vector<2x128xf32> to vector<2x32xf32>
    %133 = arith.mulf %126, %108 : vector<2x32xf32>
    %134 = arith.mulf %125, %131 : vector<2x32xf32>
    %135 = arith.addf %133, %134 : vector<2x32xf32>
    %136 = math.tanh %135 : vector<2x32xf32>
    %137 = arith.mulf %132, %136 : vector<2x32xf32>
    %c0_48 = arith.constant 0 : index
    %c5 = arith.constant 5 : index
    %138 = memref.load %arg0[%c0_48, %c5] : memref<2x8xi32, #tpu.memory_space<smem>>
    %139 = arith.index_cast %138 : i32 to index
    %c0_49 = arith.constant 0 : index
    %140 = vector.load %arg1[%139, %c0_49] : memref<104x128xf32, #tpu.memory_space<vmem>>, vector<1x128xf32>
    %c1_50 = arith.constant 1 : index
    %c5_51 = arith.constant 5 : index
    %141 = memref.load %arg0[%c1_50, %c5_51] : memref<2x8xi32, #tpu.memory_space<smem>>
    %142 = arith.index_cast %141 : i32 to index
    %c0_52 = arith.constant 0 : index
    %143 = vector.load %arg1[%142, %c0_52] : memref<104x128xf32, #tpu.memory_space<vmem>>, vector<1x128xf32>
    %144 = tpu.concatenate %140, %143 in 0 : vector<1x128xf32>, vector<1x128xf32> -> vector<2x128xf32>
    %cst_53 = arith.constant dense<0.000000e+00> : vector<2x128xf32>
    %145 = tpu.matmul %137, %0, %cst_53 {dimension_numbers = #tpu.dot_dimension_numbers<[1], [0], [0], [1], [0, 0, 1, 1], [], []>} : vector<2x32xf32>, vector<32x128xf32>, vector<2x128xf32> -> vector<2x128xf32>
    %146 = arith.addf %144, %145 : vector<2x128xf32>
    %147 = arith.negf %146 : vector<2x128xf32>
    %148 = math.exp %147 : vector<2x128xf32>
    %cst_54 = arith.constant 1.000000e+00 : f32
    %149 = vector.broadcast %cst_54 : f32 to vector<2x128xf32>
    %150 = arith.addf %149, %148 : vector<2x128xf32>
    %151 = arith.divf %149, %150 : vector<2x128xf32>
    %152 = vector.extract_strided_slice %151 {offsets = [0, 0], sizes = [2, 32], strides = [1, 1]} : vector<2x128xf32> to vector<2x32xf32>
    %153 = vector.extract_strided_slice %151 {offsets = [0, 32], sizes = [2, 32], strides = [1, 1]} : vector<2x128xf32> to vector<2x32xf32>
    %154 = vector.extract_strided_slice %151 {offsets = [0, 64], sizes = [2, 32], strides = [1, 1]} : vector<2x128xf32> to vector<2x32xf32>
    %cst_55 = arith.constant 2.000000e+00 : f32
    %155 = vector.broadcast %cst_55 : f32 to vector<2x32xf32>
    %156 = arith.mulf %155, %154 : vector<2x32xf32>
    %cst_56 = arith.constant 1.000000e+00 : f32
    %157 = vector.broadcast %cst_56 : f32 to vector<2x32xf32>
    %158 = arith.subf %156, %157 : vector<2x32xf32>
    %159 = vector.extract_strided_slice %151 {offsets = [0, 96], sizes = [2, 32], strides = [1, 1]} : vector<2x128xf32> to vector<2x32xf32>
    %160 = arith.mulf %153, %135 : vector<2x32xf32>
    %161 = arith.mulf %152, %158 : vector<2x32xf32>
    %162 = arith.addf %160, %161 : vector<2x32xf32>
    %163 = math.tanh %162 : vector<2x32xf32>
    %164 = arith.mulf %159, %163 : vector<2x32xf32>
    %c0_57 = arith.constant 0 : index
    %c6 = arith.constant 6 : index
    %165 = memref.load %arg0[%c0_57, %c6] : memref<2x8xi32, #tpu.memory_space<smem>>
    %166 = arith.index_cast %165 : i32 to index
    %c0_58 = arith.constant 0 : index
    %167 = vector.load %arg1[%166, %c0_58] : memref<104x128xf32, #tpu.memory_space<vmem>>, vector<1x128xf32>
    %c1_59 = arith.constant 1 : index
    %c6_60 = arith.constant 6 : index
    %168 = memref.load %arg0[%c1_59, %c6_60] : memref<2x8xi32, #tpu.memory_space<smem>>
    %169 = arith.index_cast %168 : i32 to index
    %c0_61 = arith.constant 0 : index
    %170 = vector.load %arg1[%169, %c0_61] : memref<104x128xf32, #tpu.memory_space<vmem>>, vector<1x128xf32>
    %171 = tpu.concatenate %167, %170 in 0 : vector<1x128xf32>, vector<1x128xf32> -> vector<2x128xf32>
    %cst_62 = arith.constant dense<0.000000e+00> : vector<2x128xf32>
    %172 = tpu.matmul %164, %0, %cst_62 {dimension_numbers = #tpu.dot_dimension_numbers<[1], [0], [0], [1], [0, 0, 1, 1], [], []>} : vector<2x32xf32>, vector<32x128xf32>, vector<2x128xf32> -> vector<2x128xf32>
    %173 = arith.addf %171, %172 : vector<2x128xf32>
    %174 = arith.negf %173 : vector<2x128xf32>
    %175 = math.exp %174 : vector<2x128xf32>
    %cst_63 = arith.constant 1.000000e+00 : f32
    %176 = vector.broadcast %cst_63 : f32 to vector<2x128xf32>
    %177 = arith.addf %176, %175 : vector<2x128xf32>
    %178 = arith.divf %176, %177 : vector<2x128xf32>
    %179 = vector.extract_strided_slice %178 {offsets = [0, 0], sizes = [2, 32], strides = [1, 1]} : vector<2x128xf32> to vector<2x32xf32>
    %180 = vector.extract_strided_slice %178 {offsets = [0, 32], sizes = [2, 32], strides = [1, 1]} : vector<2x128xf32> to vector<2x32xf32>
    %181 = vector.extract_strided_slice %178 {offsets = [0, 64], sizes = [2, 32], strides = [1, 1]} : vector<2x128xf32> to vector<2x32xf32>
    %cst_64 = arith.constant 2.000000e+00 : f32
    %182 = vector.broadcast %cst_64 : f32 to vector<2x32xf32>
    %183 = arith.mulf %182, %181 : vector<2x32xf32>
    %cst_65 = arith.constant 1.000000e+00 : f32
    %184 = vector.broadcast %cst_65 : f32 to vector<2x32xf32>
    %185 = arith.subf %183, %184 : vector<2x32xf32>
    %186 = vector.extract_strided_slice %178 {offsets = [0, 96], sizes = [2, 32], strides = [1, 1]} : vector<2x128xf32> to vector<2x32xf32>
    %187 = arith.mulf %180, %162 : vector<2x32xf32>
    %188 = arith.mulf %179, %185 : vector<2x32xf32>
    %189 = arith.addf %187, %188 : vector<2x32xf32>
    %190 = math.tanh %189 : vector<2x32xf32>
    %191 = arith.mulf %186, %190 : vector<2x32xf32>
    %c0_66 = arith.constant 0 : index
    %c7 = arith.constant 7 : index
    %192 = memref.load %arg0[%c0_66, %c7] : memref<2x8xi32, #tpu.memory_space<smem>>
    %193 = arith.index_cast %192 : i32 to index
    %c0_67 = arith.constant 0 : index
    %194 = vector.load %arg1[%193, %c0_67] : memref<104x128xf32, #tpu.memory_space<vmem>>, vector<1x128xf32>
    %c1_68 = arith.constant 1 : index
    %c7_69 = arith.constant 7 : index
    %195 = memref.load %arg0[%c1_68, %c7_69] : memref<2x8xi32, #tpu.memory_space<smem>>
    %196 = arith.index_cast %195 : i32 to index
    %c0_70 = arith.constant 0 : index
    %197 = vector.load %arg1[%196, %c0_70] : memref<104x128xf32, #tpu.memory_space<vmem>>, vector<1x128xf32>
    %198 = tpu.concatenate %194, %197 in 0 : vector<1x128xf32>, vector<1x128xf32> -> vector<2x128xf32>
    %cst_71 = arith.constant dense<0.000000e+00> : vector<2x128xf32>
    %199 = tpu.matmul %191, %0, %cst_71 {dimension_numbers = #tpu.dot_dimension_numbers<[1], [0], [0], [1], [0, 0, 1, 1], [], []>} : vector<2x32xf32>, vector<32x128xf32>, vector<2x128xf32> -> vector<2x128xf32>
    %200 = arith.addf %198, %199 : vector<2x128xf32>
    %201 = arith.negf %200 : vector<2x128xf32>
    %202 = math.exp %201 : vector<2x128xf32>
    %cst_72 = arith.constant 1.000000e+00 : f32
    %203 = vector.broadcast %cst_72 : f32 to vector<2x128xf32>
    %204 = arith.addf %203, %202 : vector<2x128xf32>
    %205 = arith.divf %203, %204 : vector<2x128xf32>
    %206 = vector.extract_strided_slice %205 {offsets = [0, 0], sizes = [2, 32], strides = [1, 1]} : vector<2x128xf32> to vector<2x32xf32>
    %207 = vector.extract_strided_slice %205 {offsets = [0, 32], sizes = [2, 32], strides = [1, 1]} : vector<2x128xf32> to vector<2x32xf32>
    %208 = vector.extract_strided_slice %205 {offsets = [0, 64], sizes = [2, 32], strides = [1, 1]} : vector<2x128xf32> to vector<2x32xf32>
    %cst_73 = arith.constant 2.000000e+00 : f32
    %209 = vector.broadcast %cst_73 : f32 to vector<2x32xf32>
    %210 = arith.mulf %209, %208 : vector<2x32xf32>
    %cst_74 = arith.constant 1.000000e+00 : f32
    %211 = vector.broadcast %cst_74 : f32 to vector<2x32xf32>
    %212 = arith.subf %210, %211 : vector<2x32xf32>
    %213 = vector.extract_strided_slice %205 {offsets = [0, 96], sizes = [2, 32], strides = [1, 1]} : vector<2x128xf32> to vector<2x32xf32>
    %214 = arith.mulf %207, %189 : vector<2x32xf32>
    %215 = arith.mulf %206, %212 : vector<2x32xf32>
    %216 = arith.addf %214, %215 : vector<2x32xf32>
    %217 = math.tanh %216 : vector<2x32xf32>
    %218 = arith.mulf %213, %217 : vector<2x32xf32>
    %c0_75 = arith.constant 0 : index
    %c0_76 = arith.constant 0 : index
    %219 = vector.load %arg3[%c0_75, %c0_76] : memref<32x128xf32, #tpu.memory_space<vmem>>, vector<32x128xf32>
    %cst_77 = arith.constant dense<0.000000e+00> : vector<2x128xf32>
    %220 = tpu.matmul %218, %219, %cst_77 {dimension_numbers = #tpu.dot_dimension_numbers<[1], [0], [0], [1], [0, 0, 1, 1], [], []>} : vector<2x32xf32>, vector<32x128xf32>, vector<2x128xf32> -> vector<2x128xf32>
    %c0_78 = arith.constant 0 : index
    %c0_79 = arith.constant 0 : index
    %221 = vector.load %arg4[%c0_78, %c0_79] : memref<1x128xf32, #tpu.memory_space<vmem>>, vector<1x128xf32>
    %222 = vector.broadcast %221 : vector<1x128xf32> to vector<2x128xf32>
    %223 = arith.addf %220, %222 : vector<2x128xf32>
    %c0_80 = arith.constant 0 : index
    %c0_81 = arith.constant 0 : index
    %224 = vector.load %arg5[%c0_80, %c0_81] : memref<2x128xf32, #tpu.memory_space<vmem>>, vector<2x128xf32>
    tpu.vector_store %arg5[%c0_80, %c0_81], %223 {strides = array<i32>} : memref<2x128xf32, #tpu.memory_space<vmem>>, vector<2x128xf32>,
    return
  }
}

</mosaic_0001>

<bundles_post_ra>
// kernel: _forward.1
= control target key start
LH: loop header
LB: loop body
LE: loop exit
PB: predicated region body
PF: predicated region fallthrough
CT: control target
= control target key end

     0   :  { %10 = vsyncpa [#allocation5], 0  ;;  %s1066_s0 = inlined_call_operand.hbm [shape: s32[2,8], index: 0, kind: input, shape index: {}]   ;;  %s1067_s1 = inlined_call_operand.hbm [shape: f32[104,128], index: 1, kind: input, shape index: {}]   ;;  %s1068_s2 = inlined_call_operand.hbm [shape: f32[32,128], index: 2, kind: input, shape index: {}]   ;;  %s1069_s3 = inlined_call_operand.hbm [shape: f32[32,128], index: 3, kind: input, shape index: {}]   ;;  %s1070_s4 = inlined_call_operand.vmem [shape: f32[1,128], index: 4, kind: input, shape index: {}]   ;;  %s1071_s5 = inlined_call_operand.hbm [shape: f32[2,128], index: 5, kind: output, shape index: {}]  }
   0x1   :  { %11 = vsyncpa [#allocation3], 0 }
   0x2   :  { %12 = vsyncpa [#allocation8], 0 }
   0x3   :  { %13 = vsyncpa [#allocation4], 0  ;;  %s40_s20 = sshll.u32 %s1068_s2, 4  ;;  %s960_s21 = smov [#allocation7]   ;;  %s41_s20 = int_to_ptr.hbm [resolvable:$true] %s40_s20 }
   0x4   :  { %s42_s22 = sshll.u32 %s960_s21, 4  ;;  %s19_s25 = sshll.u32 %s1066_s0, 4  ;;  %s43_s22 = int_to_ptr.vmem [resolvable:$true] %s42_s22  ;;  %s20_s25 = int_to_ptr.hbm [resolvable:$true] %s19_s25 }
   0x5   :  { %s961_s26 = smov 128   ;;  %s962_s27 = smov 8  }
   0x6   :  { %48 = dma.hbm_to_vmem [thread:$0]  %s41_s20, 512, %s43_s22, [#allocation8], %s961_s26, %s961_s26, %s962_s27  }
   0x7   :  { %s963_s28 = smov [#allocation2]   ;;  %s27_s6 = sshll.u32 %s1067_s1, 4  ;;  %s28_s6 = int_to_ptr.hbm [resolvable:$true] %s27_s6 }
   0x8   :  { %22 = dma.hbm_to_smem %s20_s25, 32, %s963_s28, [#allocation5]  }
   0x9   :  { %s964_s2 = smov [#allocation6]   ;;  %s53_s10 = sshll.u32 %s1069_s3, 4  ;;  %s54_s10 = int_to_ptr.hbm [resolvable:$true] %s53_s10 }
   0xa   :  { %s29_s7 = sshll.u32 %s964_s2, 4  ;;  %s965_s0 = smov [#allocation9]   ;;  %s30_s7 = int_to_ptr.vmem [resolvable:$true] %s29_s7 }
   0xb   :  { %35 = dma.hbm_to_vmem [thread:$0]  %s28_s6, 1664, %s30_s7, [#allocation3], %s961_s26, %s961_s26, %s962_s27  }
   0xc   :  { %s55_s11 = sshll.u32 %s965_s0, 4  ;;  %s56_s11 = int_to_ptr.vmem [resolvable:$true] %s55_s11 }
   0xd   :  { %61 = dma.hbm_to_vmem [thread:$0]  %s54_s10, 512, %s56_s11, [#allocation8], %s961_s26, %s961_s26, %s962_s27  }
   0xe   :  { %952 = dma.done.wait [#allocation5], 32  }
   0xf   :  { %953 = vsyncadd [#allocation5], 4294967264 }
  0x10   :  { %954 = dma.done.wait [#allocation3], 1664  }
  0x11   :  { %955 = vsyncadd [#allocation3], 4294965632 }
  0x12   :  { %956 = dma.done.wait [#allocation8], 1024  }
  0x13   :  { %957 = vsyncadd [#allocation8], 4294966272 }
  0x14   :  { %80 = sfence }
  0x15   :  { %v84_v0 = vld [vmem:[#allocation7 + $0x18] sm:$0xff]  ;;  %v83_v1 = vld [vmem:[#allocation7 + $0x10] sm:$0xff]  ;;  %v82_v2 = vld [vmem:[#allocation7 + $0x8] sm:$0xff]  ;;  %v966_v4 = vmov 0.0   ;;  %s746_s1 = sld [smem:[#allocation2 + $0x80]]  ;;  %vm94_vm0 = vcmask 1040384  }
  0x16   :  { %112 = vmatpush.msra.mxu0 %v84_v0  ;;  %186 = vmatpush.msra.mxu1 %v84_v0  ;;  %v81_v3 = vld [vmem:[#allocation7] sm:$0xff]  ;;  %s85_s3 = sld [smem:[#allocation2]]  ;;  %s967_s14 = smov 64   ;;  %vm96_vm5 = vcmask 261120  }
  0x17   :  { %260 = vmatpush.msra.mxu2 %v84_v0  ;;  %334 = vmatpush.msra.mxu3 %v84_v0  ;;  %s968_s15 = smov 32   ;;  %s750_s16 = sld [smem:[#allocation2 + $0x81]] }
  0x18   :  { %113 = vmatpush.msra.mxu0 %v83_v1  ;;  %187 = vmatpush.msra.mxu1 %v83_v1  ;;  %s749_s17 = sld [smem:[#allocation2 + $0x1]] }
  0x19   :  { %261 = vmatpush.msra.mxu2 %v83_v1  ;;  %335 = vmatpush.msra.mxu3 %v83_v1  ;;  %s755_s20 = sld [smem:[#allocation2 + $0x82]] }
  0x1a   :  { %114 = vmatpush.msra.mxu0 %v82_v2  ;;  %188 = vmatpush.msra.mxu1 %v82_v2  ;;  %s754_s21 = sld [smem:[#allocation2 + $0x2]] }
  0x1b   :  { %262 = vmatpush.msra.mxu2 %v82_v2  ;;  %336 = vmatpush.msra.mxu3 %v82_v2  ;;  %s89_s12 = scalar_lea.vmem [#allocation6], %s746_s1  ;;  %s760_s24 = sld [smem:[#allocation2 + $0x83]] }
  0x1c   :  { %115 = vmatpush.msra.mxu0 %v81_v3  ;;  %189 = vmatpush.msra.mxu1 %v81_v3  ;;  %v90_v5 = vld [vmem:[%s89_s12] sm:$0x1]  ;;  %s86_s13 = scalar_lea.vmem [#allocation6], %s85_s3  ;;  %s759_s25 = sld [smem:[#allocation2 + $0x3]] }
  0x1d   :  { %116 = vmatmul.f32.vlgmr.msra.gmra.mxu0 %v966_v4  ;;  %263 = vmatpush.msra.mxu2 %v81_v3  ;;  %v92_v6 = vrot.slane %v90_v5, 7  ;;  %v87_v7 = vld [vmem:[%s86_s13] sm:$0x1]  ;;  %s163_s18 = scalar_lea.vmem [#allocation6], %s750_s16  ;;  %s765_s28 = sld [smem:[#allocation2 + $0x84]] }
  0x1e   :  { %337 = vmatpush.msra.mxu3 %v81_v3  ;;  %408 = vmatpush.msrb.mxu0 %v84_v0  ;;  %v164_v35 = vld [vmem:[%s163_s18] sm:$0x1]  ;;  %s160_s19 = scalar_lea.vmem [#allocation6], %s749_s17  ;;  %s764_s29 = sld [smem:[#allocation2 + $0x4]] }
  0x1f   :  { %482 = vmatpush.msrb.mxu1 %v84_v0  ;;  %556 = vmatpush.msrb.mxu2 %v84_v0  ;;  %v95_v8 = vsel %vm94_vm0, %v87_v7, %v92_v6  ;;  %v166_v36 = vrot.slane %v164_v35, 7  ;;  %v161_v37 = vld [vmem:[%s160_s19] sm:$0x1]  ;;  %s237_s22 = scalar_lea.vmem [#allocation6], %s755_s20  ;;  %s770_s2 = sld [smem:[#allocation2 + $0x85]] }
  0x20   :  { %409 = vmatpush.msrb.mxu0 %v83_v1  ;;  %630 = vmatpush.msrb.mxu3 %v84_v0  ;;  %s234_s23 = scalar_lea.vmem [#allocation6], %s754_s21  ;;  %s769_s7 = sld [smem:[#allocation2 + $0x5]] }
  0x21   :  { %483 = vmatpush.msrb.mxu1 %v83_v1  ;;  %557 = vmatpush.msrb.mxu2 %v83_v1  ;;  %v168_v38 = vsel %vm94_vm0, %v161_v37, %v166_v36  ;;  %s311_s26 = scalar_lea.vmem [#allocation6], %s760_s24  ;;  %s775_s10 = sld [smem:[#allocation2 + $0x86]] }
  0x22   :  { %410 = vmatpush.msrb.mxu0 %v82_v2  ;;  %631 = vmatpush.msrb.mxu3 %v83_v1  ;;  %v238_v1 = vld [vmem:[%s237_s22] sm:$0x1]  ;;  %s308_s27 = scalar_lea.vmem [#allocation6], %s759_s25  ;;  %s774_s0 = sld [smem:[#allocation2 + $0x6]] }
  0x23   :  { %484 = vmatpush.msrb.mxu1 %v82_v2  ;;  %558 = vmatpush.msrb.mxu2 %v82_v2  ;;  %s385_s30 = scalar_lea.vmem [#allocation6], %s765_s28  ;;  %s780_s3 = sld [smem:[#allocation2 + $0x87]] }
  0x24   :  { %411 = vmatpush.msrb.mxu0 %v81_v3  ;;  %632 = vmatpush.msrb.mxu3 %v82_v2  ;;  %v240_v2 = vrot.slane %v238_v1, 7  ;;  %s382_s6 = scalar_lea.vmem [#allocation6], %s764_s29  ;;  %s779_s12 = sld [smem:[#allocation2 + $0x7]] }
  0x25   :  { %485 = vmatpush.msrb.mxu1 %v81_v3  ;;  %559 = vmatpush.msrb.mxu2 %v81_v3  ;;  %s459_s8 = scalar_lea.vmem [#allocation6], %s770_s2  ;;  %s718_s22 = sshll.u32 %s1071_s5, 4  ;;  %s719_s22 = int_to_ptr.hbm [resolvable:$true] %s718_s22 }
  0x26   :  { %633 = vmatpush.msrb.mxu3 %v81_v3  ;;  %v235_v3 = vld [vmem:[%s234_s23] sm:$0x1]  ;;  %s456_s9 = scalar_lea.vmem [#allocation6], %s769_s7 }
  0x27   :  { %v242_v4 = vsel %vm94_vm0, %v235_v3, %v240_v2  ;;  %s533_s11 = scalar_lea.vmem [#allocation6], %s775_s10 }
  0x28   :  { %s530_s1 = scalar_lea.vmem [#allocation6], %s774_s0 }
  0x29   :  { %s607_s13 = scalar_lea.vmem [#allocation6], %s780_s3 }
  0x2a   :  { %s604_s16 = scalar_lea.vmem [#allocation6], %s779_s12 }
  0x9a   :  { %v117_v9 = vpop.f32.mrf.mxu0 }
  0x9b   :  { %v120_v10 = vadd.f32 %v117_v9, %v95_v8 }
  0x9d   :  { %v747_v11 = vmul.f32 -1.442695, %v120_v10 }
  0x9f   :  { %796 = vpow2.f32 %v747_v11 }
  0xa5   :  { %v797_v12 = vpop.eup %796 }
  0xa6   :  { %v124_v13 = vadd.f32 1.0, %v797_v12 }
  0xa8   :  { %798 = vrcp.f32 %v124_v13  ;;  %v136_v17 = vand.u32 2147483648, %v124_v13  ;;  %v134_v19 = vand.u32 2147483647, %v124_v13  ;;  %vm130_vm2 = vweird.f32 %v124_v13 }
  0xaa   :  { %v137_v21 = vor.u32 1.1754944e-38, %v136_v17  ;;  %vm135_vm4 = vcmp.eq.f32.partialorder %v134_v19, 8.507059e+37 }
  0xae   :  { %v799_v14 = vpop.eup %798 }
  0xaf   :  { %v126_v15 = vmul.f32 %v799_v14, %v124_v13  ;;  %vm131_vm1 = vweird.f32 %v799_v14 }
  0xb0   :  { %vm132_vm3 = vmor %vm130_vm2, %vm131_vm1 }
  0xb1   :  { %v127_v16 = vsub.f32 1.0, %v126_v15 }
  0xb3   :  { %v128_v18 = vmul.f32 %v799_v14, %v127_v16 }
  0xb5   :  { %v129_v20 = vadd.f32 %v799_v14, %v128_v18 }
  0xb7   :  { %v133_v22 = vsel %vm132_vm3, %v799_v14, %v129_v20 }
  0xb8   :  { %v138_v23 = vsel %vm135_vm4, %v137_v21, %v133_v22 }
  0xb9   :  { %v140_v24 = vmul.f32 2.0, %v138_v23  ;;  %v142_v28 = vmul.f32 0.0, %v138_v23 }
  0xbb   :  { %v748_v25 = vadd.f32 -1.0, %v140_v24 }
  0xbd   :  { %144 = vrot.lane.b32.xlu0 %v748_v25, %s967_s14 }
 0x12f   :  { %v145_v26 = vpop.permute.xlu0 %144 }
 0x130   :  { %v147_v27 = vmul.f32 %v145_v26, %v138_v23 }
 0x132   :  { %149 = vrot.lane.b32.xlu0 %v147_v27, %s968_s15 }
 0x1a4   :  { %v150_v29 = vpop.permute.xlu0 %149 }
 0x1a5   :  { %v152_v30 = vadd.f32 %v150_v29, %v142_v28 }
 0x1a7   :  { %800 = vtanh.f32 %v152_v30 }
 0x1ad   :  { %v801_v31 = vpop.eup %800 }
 0x1ae   :  { %155 = vrot.lane.b32.xlu1 %v801_v31, %s967_s14  ;;  %v312_v31 = vld [vmem:[%s311_s26] sm:$0x1] }
 0x220   :  { %v156_v32 = vpop.permute.xlu1 %155 }
 0x221   :  { %v158_v33 = vmul.f32 %v156_v32, %v138_v23  ;;  %v314_v32 = vrot.slane %v312_v31, 7 }
 0x223   :  { %170 = vrot.lane.b32.xlu1 %v158_v33, %s968_s15  ;;  %v309_v33 = vld [vmem:[%s308_s27] sm:$0x1] }
 0x295   :  { %v171_v34 = vpop.permute.xlu1 %170 }
 0x296   :  { %751 = vmatmul.msk.f32.vlgmr.msra.gmra.mxu1 %vm96_vm5, %v171_v34  ;;  %v316_v34 = vsel %vm94_vm0, %v309_v33, %v314_v32 }
 0x313   :  { %v191_v39 = vpop.f32.mrf.mxu1 }
 0x314   :  { %v194_v40 = vadd.f32 %v191_v39, %v168_v38 }
 0x316   :  { %v752_v41 = vmul.f32 -1.442695, %v194_v40 }
 0x318   :  { %802 = vpow2.f32 %v752_v41 }
 0x31e   :  { %v803_v42 = vpop.eup %802 }
 0x31f   :  { %v198_v43 = vadd.f32 1.0, %v803_v42 }
 0x321   :  { %804 = vrcp.f32 %v198_v43  ;;  %v210_v47 = vand.u32 2147483648, %v198_v43  ;;  %v208_v49 = vand.u32 2147483647, %v198_v43  ;;  %vm204_vm7 = vweird.f32 %v198_v43 }
 0x323   :  { %v211_v51 = vor.u32 1.1754944e-38, %v210_v47  ;;  %vm209_vm9 = vcmp.eq.f32.partialorder %v208_v49, 8.507059e+37 }
 0x327   :  { %v805_v44 = vpop.eup %804 }
 0x328   :  { %v200_v45 = vmul.f32 %v805_v44, %v198_v43  ;;  %vm205_vm6 = vweird.f32 %v805_v44 }
 0x329   :  { %vm206_vm8 = vmor %vm204_vm7, %vm205_vm6 }
 0x32a   :  { %v201_v46 = vsub.f32 1.0, %v200_v45 }
 0x32c   :  { %v202_v48 = vmul.f32 %v805_v44, %v201_v46 }
 0x32e   :  { %v203_v50 = vadd.f32 %v805_v44, %v202_v48 }
 0x330   :  { %v207_v52 = vsel %vm206_vm8, %v805_v44, %v203_v50 }
 0x331   :  { %v212_v53 = vsel %vm209_vm9, %v211_v51, %v207_v52 }
 0x332   :  { %v214_v54 = vmul.f32 2.0, %v212_v53  ;;  %v216_v58 = vmul.f32 %v212_v53, %v152_v30 }
 0x334   :  { %v753_v55 = vadd.f32 -1.0, %v214_v54 }
 0x336   :  { %218 = vrot.lane.b32.xlu2 %v753_v55, %s967_s14 }
 0x390   :  { %v219_v56 = vpop.permute.xlu2 %218 }
 0x391   :  { %v221_v57 = vmul.f32 %v219_v56, %v212_v53 }
 0x393   :  { %223 = vrot.lane.b32.xlu2 %v221_v57, %s968_s15 }
 0x3ed   :  { %v224_v59 = vpop.permute.xlu2 %223 }
 0x3ee   :  { %v226_v60 = vadd.f32 %v224_v59, %v216_v58 }
 0x3f0   :  { %806 = vtanh.f32 %v226_v60 }
 0x3f6   :  { %v807_v61 = vpop.eup %806 }
 0x3f7   :  { %229 = vrot.lane.b32.xlu0 %v807_v61, %s967_s14  ;;  %v386_v61 = vld [vmem:[%s385_s30] sm:$0x1] }
 0x469   :  { %v230_v62 = vpop.permute.xlu0 %229 }
 0x46a   :  { %v232_v63 = vmul.f32 %v230_v62, %v212_v53  ;;  %v388_v62 = vrot.slane %v386_v61, 7 }
 0x46c   :  { %244 = vrot.lane.b32.xlu1 %v232_v63, %s968_s15  ;;  %v383_v63 = vld [vmem:[%s382_s6] sm:$0x1] }
 0x4de   :  { %v245_v0 = vpop.permute.xlu1 %244 }
 0x4df   :  { %756 = vmatmul.msk.f32.vlgmr.msra.gmra.mxu2 %vm96_vm5, %v245_v0  ;;  %v390_v0 = vsel %vm94_vm0, %v383_v63, %v388_v62 }
 0x562   :  { %v265_v5 = vpop.f32.mrf.mxu2 }
 0x563   :  { %v268_v6 = vadd.f32 %v265_v5, %v242_v4 }
 0x565   :  { %v757_v7 = vmul.f32 -1.442695, %v268_v6 }
 0x567   :  { %808 = vpow2.f32 %v757_v7 }
 0x56d   :  { %v809_v8 = vpop.eup %808 }
 0x56e   :  { %v272_v9 = vadd.f32 1.0, %v809_v8 }
 0x570   :  { %810 = vrcp.f32 %v272_v9  ;;  %v284_v13 = vand.u32 2147483648, %v272_v9  ;;  %v282_v15 = vand.u32 2147483647, %v272_v9  ;;  %vm278_vm11 = vweird.f32 %v272_v9 }
 0x572   :  { %v285_v17 = vor.u32 1.1754944e-38, %v284_v13  ;;  %vm283_vm13 = vcmp.eq.f32.partialorder %v282_v15, 8.507059e+37 }
 0x576   :  { %v811_v10 = vpop.eup %810 }
 0x577   :  { %v274_v11 = vmul.f32 %v811_v10, %v272_v9  ;;  %vm279_vm10 = vweird.f32 %v811_v10 }
 0x578   :  { %vm280_vm12 = vmor %vm278_vm11, %vm279_vm10 }
 0x579   :  { %v275_v12 = vsub.f32 1.0, %v274_v11 }
 0x57b   :  { %v276_v14 = vmul.f32 %v811_v10, %v275_v12 }
 0x57d   :  { %v277_v16 = vadd.f32 %v811_v10, %v276_v14 }
 0x57f   :  { %v281_v18 = vsel %vm280_vm12, %v811_v10, %v277_v16 }
 0x580   :  { %v286_v19 = vsel %vm283_vm13, %v285_v17, %v281_v18 }
 0x581   :  { %v288_v20 = vmul.f32 2.0, %v286_v19  ;;  %v290_v24 = vmul.f32 %v286_v19, %v226_v60 }
 0x583   :  { %v758_v21 = vadd.f32 -1.0, %v288_v20 }
 0x585   :  { %292 = vrot.lane.b32.xlu2 %v758_v21, %s967_s14 }
 0x5df   :  { %v293_v22 = vpop.permute.xlu2 %292 }
 0x5e0   :  { %v295_v23 = vmul.f32 %v293_v22, %v286_v19 }
 0x5e2   :  { %297 = vrot.lane.b32.xlu0 %v295_v23, %s968_s15 }
 0x654   :  { %v298_v25 = vpop.permute.xlu0 %297 }
 0x655   :  { %v300_v26 = vadd.f32 %v298_v25, %v290_v24 }
 0x657   :  { %812 = vtanh.f32 %v300_v26 }
 0x65d   :  { %v813_v27 = vpop.eup %812 }
 0x65e   :  { %303 = vrot.lane.b32.xlu1 %v813_v27, %s967_s14  ;;  %v460_v27 = vld [vmem:[%s459_s8] sm:$0x1] }
 0x6d0   :  { %v304_v28 = vpop.permute.xlu1 %303 }
 0x6d1   :  { %v306_v29 = vmul.f32 %v304_v28, %v286_v19  ;;  %v462_v28 = vrot.slane %v460_v27, 7 }
 0x6d3   :  { %318 = vrot.lane.b32.xlu2 %v306_v29, %s968_s15  ;;  %v457_v29 = vld [vmem:[%s456_s9] sm:$0x1] }
 0x72d   :  { %v319_v30 = vpop.permute.xlu2 %318 }
 0x72e   :  { %761 = vmatmul.msk.f32.vlgmr.msra.gmra.mxu3 %vm96_vm5, %v319_v30  ;;  %v464_v30 = vsel %vm94_vm0, %v457_v29, %v462_v28 }
 0x7b1   :  { %v339_v35 = vpop.f32.mrf.mxu3 }
 0x7b2   :  { %v342_v36 = vadd.f32 %v339_v35, %v316_v34 }
 0x7b4   :  { %v762_v37 = vmul.f32 -1.442695, %v342_v36 }
 0x7b6   :  { %814 = vpow2.f32 %v762_v37 }
 0x7bc   :  { %v815_v38 = vpop.eup %814 }
 0x7bd   :  { %v346_v39 = vadd.f32 1.0, %v815_v38 }
 0x7bf   :  { %816 = vrcp.f32 %v346_v39  ;;  %v358_v43 = vand.u32 2147483648, %v346_v39  ;;  %v356_v45 = vand.u32 2147483647, %v346_v39  ;;  %vm352_vm15 = vweird.f32 %v346_v39 }
 0x7c1   :  { %v359_v47 = vor.u32 1.1754944e-38, %v358_v43  ;;  %vm357_vm2 = vcmp.eq.f32.partialorder %v356_v45, 8.507059e+37 }
 0x7c5   :  { %v817_v40 = vpop.eup %816 }
 0x7c6   :  { %v348_v41 = vmul.f32 %v817_v40, %v346_v39  ;;  %vm353_vm14 = vweird.f32 %v817_v40 }
 0x7c7   :  { %vm354_vm1 = vmor %vm352_vm15, %vm353_vm14 }
 0x7c8   :  { %v349_v42 = vsub.f32 1.0, %v348_v41 }
 0x7ca   :  { %v350_v44 = vmul.f32 %v817_v40, %v349_v42 }
 0x7cc   :  { %v351_v46 = vadd.f32 %v817_v40, %v350_v44 }
 0x7ce   :  { %v355_v48 = vsel %vm354_vm1, %v817_v40, %v351_v46 }
 0x7cf   :  { %v360_v49 = vsel %vm357_vm2, %v359_v47, %v355_v48 }
 0x7d0   :  { %v362_v50 = vmul.f32 2.0, %v360_v49  ;;  %v364_v54 = vmul.f32 %v360_v49, %v300_v26 }
 0x7d2   :  { %v763_v51 = vadd.f32 -1.0, %v362_v50 }
 0x7d4   :  { %366 = vrot.lane.b32.xlu0 %v763_v51, %s967_s14 }
 0x846   :  { %v367_v52 = vpop.permute.xlu0 %366 }
 0x847   :  { %v369_v53 = vmul.f32 %v367_v52, %v360_v49 }
 0x849   :  { %371 = vrot.lane.b32.xlu1 %v369_v53, %s968_s15 }
 0x8bb   :  { %v372_v55 = vpop.permute.xlu1 %371 }
 0x8bc   :  { %v374_v56 = vadd.f32 %v372_v55, %v364_v54 }
 0x8be   :  { %818 = vtanh.f32 %v374_v56 }
 0x8c4   :  { %v819_v57 = vpop.eup %818 }
 0x8c5   :  { %377 = vrot.lane.b32.xlu2 %v819_v57, %s967_s14  ;;  %v534_v57 = vld [vmem:[%s533_s11] sm:$0x1] }
 0x91f   :  { %v378_v58 = vpop.permute.xlu2 %377 }
 0x920   :  { %v380_v59 = vmul.f32 %v378_v58, %v360_v49  ;;  %v536_v58 = vrot.slane %v534_v57, 7  ;;  %v795_v57 = vld [vmem:[%s1070_s4] ss:$0 sm:$0xff] }
 0x922   :  { %392 = vrot.lane.b32.xlu0 %v380_v59, %s968_s15  ;;  %v531_v59 = vld [vmem:[%s530_s1] sm:$0x1] }
 0x994   :  { %v393_v60 = vpop.permute.xlu0 %392 }
 0x995   :  { %766 = vmatmul.msk.f32.vlgmr.msrb.gmra.mxu0 %vm96_vm5, %v393_v60  ;;  %v538_v60 = vsel %vm94_vm0, %v531_v59, %v536_v58 }
 0xa12   :  { %v413_v1 = vpop.f32.mrf.mxu0 }
 0xa13   :  { %v416_v2 = vadd.f32 %v413_v1, %v390_v0 }
 0xa15   :  { %v767_v3 = vmul.f32 -1.442695, %v416_v2 }
 0xa17   :  { %820 = vpow2.f32 %v767_v3 }
 0xa1d   :  { %v821_v4 = vpop.eup %820 }
 0xa1e   :  { %v420_v5 = vadd.f32 1.0, %v821_v4 }
 0xa20   :  { %822 = vrcp.f32 %v420_v5  ;;  %v432_v9 = vand.u32 2147483648, %v420_v5  ;;  %v430_v11 = vand.u32 2147483647, %v420_v5  ;;  %vm426_vm4 = vweird.f32 %v420_v5 }
 0xa22   :  { %v433_v13 = vor.u32 1.1754944e-38, %v432_v9  ;;  %vm431_vm7 = vcmp.eq.f32.partialorder %v430_v11, 8.507059e+37 }
 0xa26   :  { %v823_v6 = vpop.eup %822 }
 0xa27   :  { %v422_v7 = vmul.f32 %v823_v6, %v420_v5  ;;  %vm427_vm3 = vweird.f32 %v823_v6 }
 0xa28   :  { %vm428_vm6 = vmor %vm426_vm4, %vm427_vm3 }
 0xa29   :  { %v423_v8 = vsub.f32 1.0, %v422_v7 }
 0xa2b   :  { %v424_v10 = vmul.f32 %v823_v6, %v423_v8 }
 0xa2d   :  { %v425_v12 = vadd.f32 %v823_v6, %v424_v10 }
 0xa2f   :  { %v429_v14 = vsel %vm428_vm6, %v823_v6, %v425_v12 }
 0xa30   :  { %v434_v15 = vsel %vm431_vm7, %v433_v13, %v429_v14 }
 0xa31   :  { %v436_v16 = vmul.f32 2.0, %v434_v15  ;;  %v438_v20 = vmul.f32 %v434_v15, %v374_v56 }
 0xa33   :  { %v768_v17 = vadd.f32 -1.0, %v436_v16 }
 0xa35   :  { %440 = vrot.lane.b32.xlu1 %v768_v17, %s967_s14 }
 0xaa7   :  { %v441_v18 = vpop.permute.xlu1 %440 }
 0xaa8   :  { %v443_v19 = vmul.f32 %v441_v18, %v434_v15 }
 0xaaa   :  { %445 = vrot.lane.b32.xlu2 %v443_v19, %s968_s15 }
 0xb04   :  { %v446_v21 = vpop.permute.xlu2 %445 }
 0xb05   :  { %v448_v22 = vadd.f32 %v446_v21, %v438_v20 }
 0xb07   :  { %824 = vtanh.f32 %v448_v22 }
 0xb0d   :  { %v825_v23 = vpop.eup %824 }
 0xb0e   :  { %451 = vrot.lane.b32.xlu0 %v825_v23, %s967_s14  ;;  %v608_v23 = vld [vmem:[%s607_s13] sm:$0x1] }
 0xb80   :  { %v452_v24 = vpop.permute.xlu0 %451 }
 0xb81   :  { %v454_v25 = vmul.f32 %v452_v24, %v434_v15  ;;  %v610_v24 = vrot.slane %v608_v23, 7 }
 0xb83   :  { %466 = vrot.lane.b32.xlu1 %v454_v25, %s968_s15  ;;  %v605_v25 = vld [vmem:[%s604_s16] sm:$0x1] }
 0xbf5   :  { %v467_v26 = vpop.permute.xlu1 %466 }
 0xbf6   :  { %771 = vmatmul.msk.f32.vlgmr.msrb.gmra.mxu1 %vm96_vm5, %v467_v26  ;;  %v612_v26 = vsel %vm94_vm0, %v605_v25, %v610_v24 }
 0xc73   :  { %v487_v31 = vpop.f32.mrf.mxu1 }
 0xc74   :  { %v490_v32 = vadd.f32 %v487_v31, %v464_v30 }
 0xc76   :  { %v772_v33 = vmul.f32 -1.442695, %v490_v32 }
 0xc78   :  { %826 = vpow2.f32 %v772_v33 }
 0xc7e   :  { %v827_v34 = vpop.eup %826 }
 0xc7f   :  { %v494_v35 = vadd.f32 1.0, %v827_v34 }
 0xc81   :  { %828 = vrcp.f32 %v494_v35  ;;  %v506_v39 = vand.u32 2147483648, %v494_v35  ;;  %v504_v41 = vand.u32 2147483647, %v494_v35  ;;  %vm500_vm9 = vweird.f32 %v494_v35 }
 0xc83   :  { %v507_v43 = vor.u32 1.1754944e-38, %v506_v39  ;;  %vm505_vm11 = vcmp.eq.f32.partialorder %v504_v41, 8.507059e+37 }
 0xc87   :  { %v829_v36 = vpop.eup %828 }
 0xc88   :  { %v496_v37 = vmul.f32 %v829_v36, %v494_v35  ;;  %vm501_vm8 = vweird.f32 %v829_v36 }
 0xc89   :  { %vm502_vm10 = vmor %vm500_vm9, %vm501_vm8 }
 0xc8a   :  { %v497_v38 = vsub.f32 1.0, %v496_v37 }
 0xc8c   :  { %v498_v40 = vmul.f32 %v829_v36, %v497_v38 }
 0xc8e   :  { %v499_v42 = vadd.f32 %v829_v36, %v498_v40 }
 0xc90   :  { %v503_v44 = vsel %vm502_vm10, %v829_v36, %v499_v42 }
 0xc91   :  { %v508_v45 = vsel %vm505_vm11, %v507_v43, %v503_v44 }
 0xc92   :  { %v510_v46 = vmul.f32 2.0, %v508_v45  ;;  %v512_v50 = vmul.f32 %v508_v45, %v448_v22 }
 0xc94   :  { %v773_v47 = vadd.f32 -1.0, %v510_v46 }
 0xc96   :  { %514 = vrot.lane.b32.xlu2 %v773_v47, %s967_s14 }
 0xcf0   :  { %v515_v48 = vpop.permute.xlu2 %514 }
 0xcf1   :  { %v517_v49 = vmul.f32 %v515_v48, %v508_v45 }
 0xcf3   :  { %519 = vrot.lane.b32.xlu0 %v517_v49, %s968_s15 }
 0xd65   :  { %v520_v51 = vpop.permute.xlu0 %519 }
 0xd66   :  { %v522_v52 = vadd.f32 %v520_v51, %v512_v50  ;;  %v680_v50 = vld [vmem:[#allocation9 + $0x18] sm:$0xff]  ;;  %v679_v51 = vld [vmem:[#allocation9 + $0x10] sm:$0xff] }
 0xd67   :  { %702 = vmatpush.msra.mxu0 %v680_v50 }
 0xd68   :  { %830 = vtanh.f32 %v522_v52 }
 0xd69   :  { %703 = vmatpush.msra.mxu0 %v679_v51 }
 0xd6e   :  { %v831_v53 = vpop.eup %830 }
 0xd6f   :  { %525 = vrot.lane.b32.xlu1 %v831_v53, %s967_s14  ;;  %v677_v53 = vld [vmem:[#allocation9] sm:$0xff] }
 0xde1   :  { %v526_v54 = vpop.permute.xlu1 %525 }
 0xde2   :  { %v528_v55 = vmul.f32 %v526_v54, %v508_v45 }
 0xde4   :  { %540 = vrot.lane.b32.xlu2 %v528_v55, %s968_s15 }
 0xe3e   :  { %v541_v56 = vpop.permute.xlu2 %540 }
 0xe3f   :  { %776 = vmatmul.msk.f32.vlgmr.msrb.gmra.mxu2 %vm96_vm5, %v541_v56 }
 0xec2   :  { %v561_v61 = vpop.f32.mrf.mxu2 }
 0xec3   :  { %v564_v62 = vadd.f32 %v561_v61, %v538_v60 }
 0xec5   :  { %v777_v63 = vmul.f32 -1.442695, %v564_v62 }
 0xec7   :  { %832 = vpow2.f32 %v777_v63 }
 0xecd   :  { %v833_v0 = vpop.eup %832 }
 0xece   :  { %v568_v1 = vadd.f32 1.0, %v833_v0 }
 0xed0   :  { %834 = vrcp.f32 %v568_v1  ;;  %v580_v5 = vand.u32 2147483648, %v568_v1  ;;  %v578_v7 = vand.u32 2147483647, %v568_v1  ;;  %vm574_vm13 = vweird.f32 %v568_v1 }
 0xed2   :  { %v581_v9 = vor.u32 1.1754944e-38, %v580_v5  ;;  %vm579_vm15 = vcmp.eq.f32.partialorder %v578_v7, 8.507059e+37 }
 0xed6   :  { %v835_v2 = vpop.eup %834 }
 0xed7   :  { %v570_v3 = vmul.f32 %v835_v2, %v568_v1  ;;  %vm575_vm12 = vweird.f32 %v835_v2 }
 0xed8   :  { %vm576_vm14 = vmor %vm574_vm13, %vm575_vm12 }
 0xed9   :  { %v571_v4 = vsub.f32 1.0, %v570_v3 }
 0xedb   :  { %v572_v6 = vmul.f32 %v835_v2, %v571_v4 }
 0xedd   :  { %v573_v8 = vadd.f32 %v835_v2, %v572_v6 }
 0xedf   :  { %v577_v10 = vsel %vm576_vm14, %v835_v2, %v573_v8 }
 0xee0   :  { %v582_v11 = vsel %vm579_vm15, %v581_v9, %v577_v10 }
 0xee1   :  { %v584_v12 = vmul.f32 2.0, %v582_v11  ;;  %v586_v16 = vmul.f32 %v582_v11, %v522_v52  ;;  %v678_v52 = vld [vmem:[#allocation9 + $0x8] sm:$0xff] }
 0xee2   :  { %704 = vmatpush.msra.mxu0 %v678_v52 }
 0xee3   :  { %v778_v13 = vadd.f32 -1.0, %v584_v12 }
 0xee4   :  { %705 = vmatpush.msra.mxu0 %v677_v53 }
 0xee5   :  { %588 = vrot.lane.b32.xlu0 %v778_v13, %s967_s14 }
 0xf57   :  { %v589_v14 = vpop.permute.xlu0 %588 }
 0xf58   :  { %v591_v15 = vmul.f32 %v589_v14, %v582_v11 }
 0xf5a   :  { %593 = vrot.lane.b32.xlu1 %v591_v15, %s968_s15 }
 0xfcc   :  { %v594_v17 = vpop.permute.xlu1 %593 }
 0xfcd   :  { %v596_v18 = vadd.f32 %v594_v17, %v586_v16 }
 0xfcf   :  { %836 = vtanh.f32 %v596_v18 }
 0xfd5   :  { %v837_v19 = vpop.eup %836 }
 0xfd6   :  { %599 = vrot.lane.b32.xlu2 %v837_v19, %s967_s14 }
0x1030   :  { %v600_v20 = vpop.permute.xlu2 %599 }
0x1031   :  { %v602_v21 = vmul.f32 %v600_v20, %v582_v11 }
0x1033   :  { %614 = vrot.lane.b32.xlu0 %v602_v21, %s968_s15 }
0x10a5   :  { %v615_v22 = vpop.permute.xlu0 %614 }
0x10a6   :  { %781 = vmatmul.msk.f32.vlgmr.msrb.gmra.mxu3 %vm96_vm5, %v615_v22 }
0x1129   :  { %v635_v27 = vpop.f32.mrf.mxu3 }
0x112a   :  { %v638_v28 = vadd.f32 %v635_v27, %v612_v26 }
0x112c   :  { %v782_v29 = vmul.f32 -1.442695, %v638_v28 }
0x112e   :  { %838 = vpow2.f32 %v782_v29 }
0x1134   :  { %v839_v30 = vpop.eup %838 }
0x1135   :  { %v642_v31 = vadd.f32 1.0, %v839_v30 }
0x1137   :  { %840 = vrcp.f32 %v642_v31  ;;  %v654_v35 = vand.u32 2147483648, %v642_v31  ;;  %v652_v37 = vand.u32 2147483647, %v642_v31  ;;  %vm648_vm2 = vweird.f32 %v642_v31 }
0x1139   :  { %v655_v39 = vor.u32 1.1754944e-38, %v654_v35  ;;  %vm653_vm0 = vcmp.eq.f32.partialorder %v652_v37, 8.507059e+37 }
0x113d   :  { %v841_v32 = vpop.eup %840 }
0x113e   :  { %v644_v33 = vmul.f32 %v841_v32, %v642_v31  ;;  %vm649_vm1 = vweird.f32 %v841_v32 }
0x113f   :  { %vm650_vm3 = vmor %vm648_vm2, %vm649_vm1 }
0x1140   :  { %v645_v34 = vsub.f32 1.0, %v644_v33 }
0x1142   :  { %v646_v36 = vmul.f32 %v841_v32, %v645_v34 }
0x1144   :  { %v647_v38 = vadd.f32 %v841_v32, %v646_v36 }
0x1146   :  { %v651_v40 = vsel %vm650_vm3, %v841_v32, %v647_v38 }
0x1147   :  { %v656_v41 = vsel %vm653_vm0, %v655_v39, %v651_v40 }
0x1148   :  { %v658_v42 = vmul.f32 2.0, %v656_v41  ;;  %v660_v46 = vmul.f32 %v656_v41, %v596_v18 }
0x114a   :  { %v783_v43 = vadd.f32 -1.0, %v658_v42 }
0x114c   :  { %662 = vrot.lane.b32.xlu1 %v783_v43, %s967_s14 }
0x11be   :  { %v663_v44 = vpop.permute.xlu1 %662 }
0x11bf   :  { %v665_v45 = vmul.f32 %v663_v44, %v656_v41 }
0x11c1   :  { %667 = vrot.lane.b32.xlu2 %v665_v45, %s968_s15 }
0x121b   :  { %v668_v47 = vpop.permute.xlu2 %667 }
0x121c   :  { %v670_v48 = vadd.f32 %v668_v47, %v660_v46 }
0x121e   :  { %842 = vtanh.f32 %v670_v48 }
0x1224   :  { %v843_v49 = vpop.eup %842 }
0x1225   :  { %673 = vrot.lane.b32.xlu0 %v843_v49, %s967_s14  ;;  %s969_s14 = smov [#allocation10]  }
0x1226   :  { %s716_s19 = sshll.u32 %s969_s14, 4  ;;  %s717_s19 = int_to_ptr.vmem [resolvable:$true] %s716_s19 }
0x1297   :  { %v674_v54 = vpop.permute.xlu0 %673 }
0x1298   :  { %v676_v55 = vmul.f32 %v674_v54, %v656_v41 }
0x129a   :  { %686 = vrot.lane.b32.xlu1 %v676_v55, %s968_s15 }
0x130c   :  { %v687_v56 = vpop.permute.xlu1 %686 }
0x130d   :  { %784 = vmatmul.msk.f32.vlgmr.msra.gmra.mxu0 %vm96_vm5, %v687_v56 }
0x138a   :  { %v707_v58 = vpop.f32.mrf.mxu0 }
0x138b   :  { %v708_v59 = vadd.f32 %v795_v57, %v707_v58 }
0x138d   :  { %710 = vst [vmem:[#allocation10] sm:$0x3] %v708_v59 }
0x138e   :  { %721 = dma.vmem_to_hbm [thread:$0]  %s717_s19, 32, %s719_s22, [#allocation4]  }
0x138f   :  { %958 = dma.done.wait [#allocation4], 32  }
0x1390   :  { %959 = vsyncadd [#allocation4], 4294967264 }
0x1391   :  { %726 = vsyncpa [#allocation3], 1 }
0x1392   :  { %727 = vsyncpa [#allocation8], 1 }
0x1393   :  { %728 = vsyncpa [#allocation4], 1 }
0x1394   :  { %729 = vsyncpa [#allocation5], 1 }

</bundles_post_ra>
